<compile_context>
chip_gen: v7x
topology: tpu7x:2x2x1
jax: 0.10.0
libtpu: 0.0.40
codegen_flags: <defaults>
</compile_context>

<pallas_src>
import functools
import math

import jax
import jax.numpy as jnp
from jax import lax
from jax.experimental import pallas as pl
from jax.experimental.pallas import tpu as pltpu


def _round_up(a: int, b: int) -> int:
    return ((a + b - 1) // b) * b


def _sublane_align(dtype) -> int:
    # Second-to-last block dim must be a multiple of 8 (4B), 16 (2B), 32 (1B).
    return {4: 8, 2: 16, 1: 32}.get(jnp.dtype(dtype).itemsize, 8)


def _choose_tiles(n: int, dim: int, row_align: int):
    """tk-biased tile sizes from a generation-aware double-buffered VMEM budget."""
    kind = ""
    try:
        kind = jax.devices()[0].device_kind.lower()
    except Exception:  # pragma: no cover - device query should not fail on TPU
        pass
    big_vmem = ("v6" in kind) or ("v7" in kind)
    # Per-step input VMEM = 3 arrays x 2 buffers x tm x tk x 4 B (f32 upper bound).
    budget_bytes = (24 if big_vmem else 12) * 1024 * 1024
    elems_budget = budget_bytes // (3 * 2 * 4)          # tm * tk budget

    tk = min(2048, _round_up(dim, 128))                  # bias toward long rows
    tm_budget = max(row_align, ((elems_budget // tk) // row_align) * row_align)
    tm = min(_round_up(n, row_align), tm_budget, 1024)

    # v7x: keep both TensorCores fed on the "parallel" row axis.  Only split
    # when a single row tile would otherwise cover all rows.
    if tm >= n and n > row_align:
        tm = max(row_align, _round_up((n + 1) // 2, row_align))
    return tm, tk


def _nloss_gd_kernel(x_ref, y_ref, sqb_ref, out_ref, *,
                     n, dim, tm, tk, mask_rows, mask_cols):
    i = pl.program_id(0)   # row-tile index      ("parallel")
    k = pl.program_id(1)   # feature-tile index  ("arbitrary" reduction, last axis)

    # out_ref's block index ignores k -> it stays VMEM-resident across the
    # reduction axis and doubles as the accumulator.
    @pl.when(k == 0)
    def _init():
        out_ref[...] = jnp.zeros_like(out_ref)

    x = x_ref[...].astype(jnp.float32)
    y = y_ref[...].astype(jnp.float32)
    sb = sqb_ref[...].astype(jnp.float32)

    beta = sb * sb          # Beta = sq_Beta ** 2
    diff = y - x

    # Mask padded rows/cols of edge tiles (only emitted when padding exists).
    # NOTE: must happen BEFORE jnp.log so padding garbage never produces NaN/Inf
    # that survives the reduction.
    if mask_rows or mask_cols:
        valid = None
        if mask_rows:
            rows = i * tm + lax.broadcasted_iota(jnp.int32, (tm, 1), 0)
            valid = rows < n
        if mask_cols:
            cols = k * tk + lax.broadcasted_iota(jnp.int32, (1, tk), 1)
            col_ok = cols < dim
            valid = col_ok if valid is None else (valid & col_ok)
        beta = jnp.where(valid, beta, 1.0)   # log(1) == 0 -> zero contribution
        diff = jnp.where(valid, diff, 0.0)

    # Fused per-element contribution; 0.5 factors / norm term hoisted to wrapper:
    #   log_p_row = 0.5 * sum_j(log(beta) - diff^2 * beta) + norm_term
    contrib = jnp.log(beta) - diff * diff * beta        # (tm, tk)

    # Deferred cross-lane reduce: fold sublane row-groups only (pure VALU adds,
    # layout-preserving leading-dim split).  The cross-lane/sublane reduce of the
    # (8, tk) partial happens once, in the XLA epilogue.
    part = jnp.sum(contrib.reshape(tm // 8, 8, tk), axis=0)   # (8, tk)
    out_ref[...] = out_ref[...] + part[None]


def nloss_gd(x, y, sq_beta, *, tm=None, tk=None):
    """Equivalent of Nloss_GD(dim).forward(x, y, sq_Beta). Returns a scalar f32."""
    assert x.shape == y.shape == sq_beta.shape and x.ndim == 2
    n, dim = x.shape
    row_align = max(_sublane_align(x.dtype),
                    _sublane_align(y.dtype),
                    _sublane_align(sq_beta.dtype))

    auto_tm, auto_tk = _choose_tiles(n, dim, row_align)
    if tk is None:
        tk = auto_tk
    else:
        tk = min(_round_up(tk, 128), _round_up(dim, 128))
    if tm is None:
        tm = auto_tm
    else:
        tm = min(_round_up(tm, row_align), _round_up(n, row_align))

    grid_m = pl.cdiv(n, tm)
    grid_k = pl.cdiv(dim, tk)
    mask_rows = (n % tm) != 0
    mask_cols = (dim % tk) != 0

    kernel = functools.partial(
        _nloss_gd_kernel, n=n, dim=dim, tm=tm, tk=tk,
        mask_rows=mask_rows, mask_cols=mask_cols)

    in_bytes = n * dim * sum(jnp.dtype(a.dtype).itemsize for a in (x, y, sq_beta))
    cost = pl.CostEstimate(
        flops=6 * n * dim,                      # mul/sub/fma per element (approx)
        transcendentals=n * dim,                # one log per element
        bytes_accessed=in_bytes + grid_m * 8 * tk * 4,
    )

    partials = pl.pallas_call(
        kernel,
        # One lane-dense (8, tk) partial-sum slab per row tile.
        out_shape=jax.ShapeDtypeStruct((grid_m, 8, tk), jnp.float32),
        grid_spec=pltpu.PrefetchScalarGridSpec(
            num_scalar_prefetch=0,
            grid=(grid_m, grid_k),
            in_specs=[
                pl.BlockSpec((tm, tk), lambda i, k: (i, k)),
                pl.BlockSpec((tm, tk), lambda i, k: (i, k)),
                pl.BlockSpec((tm, tk), lambda i, k: (i, k)),
            ],
            out_specs=pl.BlockSpec((1, 8, tk), lambda i, k: (i, 0, 0)),
        ),
        compiler_params=pltpu.CompilerParams(
            dimension_semantics=("parallel", "arbitrary"),
        ),
        cost_estimate=cost,
    )(x, y, sq_beta)

    # Tiny epilogue in XLA: the ONLY cross-lane reduce, then hoisted constants.
    total = jnp.sum(partials)                      # sum full slab (all entries valid)
    norm_term = jnp.float32(0.5 * math.log(2.0 * math.pi) * dim)
    # E = -0.5 * S / N + 0.5 * log(2*pi) * dim
    return (-0.5) * (total / jnp.float32(n)) + norm_term


def nloss_gd_ref(x, y, sq_beta):
    """Pure-JAX reference mirroring the PyTorch code (for sanity check)."""
    x = x.astype(jnp.float32)
    y = y.astype(jnp.float32)
    beta = sq_beta.astype(jnp.float32) ** 2
    dim = x.shape[1]
    log_det = 0.5 * jnp.sum(jnp.log(beta), axis=1)
    exponent = jnp.sum(-0.5 * (y - x) ** 2 * beta, axis=1)
    norm_term = -0.5 * jnp.log(2.0 * jnp.pi) * dim
    log_p = log_det + exponent + norm_term
    return jnp.sum(-log_p) / x.shape[0]


if __name__ == "__main__":
    key = jax.random.PRNGKey(0)

    def make_inputs(n, dim, k, dtype=jnp.float32):
        kx, ky, kb = jax.random.split(k, 3)
        x = jax.random.normal(kx, (n, dim), dtype=jnp.float32).astype(dtype)
        y = jax.random.normal(ky, (n, dim), dtype=jnp.float32).astype(dtype)
        # sq_Beta kept away from zero (positive precision output of the network).
        sq_beta = (0.5 + jax.random.uniform(kb, (n, dim), dtype=jnp.float32)).astype(dtype)
        return x, y, sq_beta

    k1, k2, k3, k4, k5 = jax.random.split(key, 5)

    # 1) Small aligned case: batch N = 8, flattened feature dim = 128.
    x, y, b = make_inputs(8, 128, k1)
    e = jax.block_until_ready(nloss_gd(x, y, b))
    e_ref = nloss_gd_ref(x, y, b)
    assert jnp.allclose(e, e_ref, rtol=1e-5, atol=1e-4), (e, e_ref)

    # 2) Multi-tile accumulation: tiny explicit tiles force a (3, 3) grid
    #    (exercises the pl.when init + out_ref accumulator path).
    x, y, b = make_inputs(24, 384, k2)
    e = jax.block_until_ready(nloss_gd(x, y, b, tm=8, tk=128))
    e_ref = nloss_gd_ref(x, y, b)
    assert jnp.allclose(e, e_ref, rtol=1e-5, atol=1e-4), (e, e_ref)

    # 3) Ragged shapes: exercises row+col padding masks and the grid_m>=2 split.
    x, y, b = make_inputs(10, 200, k3)
    e = jax.block_until_ready(nloss_gd(x, y, b))
    e_ref = nloss_gd_ref(x, y, b)
    assert jnp.allclose(e, e_ref, rtol=1e-5, atol=1e-4), (e, e_ref)

    # 4) Auto-tiled path with grid_k > 1 and a ragged feature edge.
    x, y, b = make_inputs(32, 2304, k4)
    e = jax.block_until_ready(nloss_gd(x, y, b))
    e_ref = nloss_gd_ref(x, y, b)
    assert jnp.allclose(e, e_ref, rtol=1e-5, atol=1e-3), (e, e_ref)

    # 5) bf16 inputs (halves HBM traffic); kernel upcasts to f32 internally.
    x, y, b = make_inputs(16, 256, k5, dtype=jnp.bfloat16)
    e = jax.block_until_ready(nloss_gd(x, y, b))
    e_ref = nloss_gd_ref(x, y, b)
    assert jnp.allclose(e, e_ref, rtol=1e-4, atol=1e-2), (e, e_ref)

    print("KERNEL_OK")
</pallas_src>

<mosaic_0001>
module attributes {stable_mosaic.version = 11 : i64} {
  func.func @_nloss_gd_kernel(%arg0: i32, %arg1: i32, %arg2: memref<8x128xf32, #tpu.memory_space<vmem>>, %arg3: memref<8x128xf32, #tpu.memory_space<vmem>>, %arg4: memref<8x128xf32, #tpu.memory_space<vmem>>, %arg5: memref<1x8x128xf32, #tpu.memory_space<vmem>>) attributes {dimension_semantics = [#tpu.dimension_semantics<parallel>, #tpu.dimension_semantics<arbitrary>], iteration_bounds = array<i64: 1, 1>, scalar_prefetch = 0 : i64, scratch_operands = 0 : i64, tpu.core_type = #tpu.core_type<tc>, window_params = [{transform_indices = @transform_0, window_bounds = array<i64: 8, 128>}, {transform_indices = @transform_1, window_bounds = array<i64: 8, 128>}, {transform_indices = @transform_2, window_bounds = array<i64: 8, 128>}, {transform_indices = @transform_3, window_bounds = array<i64: 1, 8, 128>}]} {
    %c0_i32 = arith.constant 0 : i32
    %0 = arith.cmpi eq, %arg1, %c0_i32 : i32
    %1 = arith.extui %0 : i1 to i32
    %c0_i32_0 = arith.constant 0 : i32
    %2 = arith.cmpi ne, %1, %c0_i32_0 : i32
    scf.if %2 {
      %cst_12 = arith.constant 0.000000e+00 : f32
      %18 = vector.broadcast %cst_12 : f32 to vector<1x8x128xf32>
      %c0_13 = arith.constant 0 : index
      %c0_14 = arith.constant 0 : index
      %c0_15 = arith.constant 0 : index
      %19 = vector.load %arg5[%c0_13, %c0_14, %c0_15] : memref<1x8x128xf32, #tpu.memory_space<vmem>>, vector<1x8x128xf32>
      tpu.vector_store %arg5[%c0_13, %c0_14, %c0_15], %18 {strides = array<i32>} : memref<1x8x128xf32, #tpu.memory_space<vmem>>, vector<1x8x128xf32>,
    } else {
    }
    %c0 = arith.constant 0 : index
    %c0_1 = arith.constant 0 : index
    %3 = vector.load %arg2[%c0, %c0_1] : memref<8x128xf32, #tpu.memory_space<vmem>>, vector<8x128xf32>
    %c0_2 = arith.constant 0 : index
    %c0_3 = arith.constant 0 : index
    %4 = vector.load %arg3[%c0_2, %c0_3] : memref<8x128xf32, #tpu.memory_space<vmem>>, vector<8x128xf32>
    %c0_4 = arith.constant 0 : index
    %c0_5 = arith.constant 0 : index
    %5 = vector.load %arg4[%c0_4, %c0_5] : memref<8x128xf32, #tpu.memory_space<vmem>>, vector<8x128xf32>
    %6 = arith.mulf %5, %5 : vector<8x128xf32>
    %7 = arith.subf %4, %3 : vector<8x128xf32>
    %8 = math.log %6 : vector<8x128xf32>
    %9 = arith.mulf %7, %7 : vector<8x128xf32>
    %10 = arith.mulf %9, %6 : vector<8x128xf32>
    %11 = arith.subf %8, %10 : vector<8x128xf32>
    %12 = vector.shape_cast %11 : vector<8x128xf32> to vector<1x8x128xf32>
    %cst = arith.constant dense<0.000000e+00> : vector<8x128xf32>
    %13 = vector.multi_reduction <add>, %12, %cst [0] : vector<1x8x128xf32> to vector<8x128xf32>
    %c0_6 = arith.constant 0 : index
    %c0_7 = arith.constant 0 : index
    %c0_8 = arith.constant 0 : index
    %14 = vector.load %arg5[%c0_6, %c0_7, %c0_8] : memref<1x8x128xf32, #tpu.memory_space<vmem>>, vector<1x8x128xf32>
    %15 = vector.shape_cast %13 : vector<8x128xf32> to vector<1x8x128xf32>
    %16 = arith.addf %14, %15 : vector<1x8x128xf32>
    %c0_9 = arith.constant 0 : index
    %c0_10 = arith.constant 0 : index
    %c0_11 = arith.constant 0 : index
    %17 = vector.load %arg5[%c0_9, %c0_10, %c0_11] : memref<1x8x128xf32, #tpu.memory_space<vmem>>, vector<1x8x128xf32>
    tpu.vector_store %arg5[%c0_9, %c0_10, %c0_11], %16 {strides = array<i32>} : memref<1x8x128xf32, #tpu.memory_space<vmem>>, vector<1x8x128xf32>,
    return
  }
  func.func @transform_0(%arg0: i32, %arg1: i32) -> (i32, i32) {
    %c0_i32 = arith.constant 0 : i32
    return %arg0, %arg1 : i32, i32
  }
  func.func @transform_1(%arg0: i32, %arg1: i32) -> (i32, i32) {
    %c0_i32 = arith.constant 0 : i32
    return %arg0, %arg1 : i32, i32
  }
  func.func @transform_2(%arg0: i32, %arg1: i32) -> (i32, i32) {
    %c0_i32 = arith.constant 0 : i32
    return %arg0, %arg1 : i32, i32
  }
  func.func @transform_3(%arg0: i32, %arg1: i32) -> (i32, i32, i32) {
    %c0_i32 = arith.constant 0 : i32
    %c0_i32_0 = arith.constant 0 : i32
    %c0_i32_1 = arith.constant 0 : i32
    return %arg0, %c0_i32, %c0_i32_0 : i32, i32, i32
  }
}

</mosaic_0001>

<bundles_post_ra>
// kernel: tpu_custom_call.1
= control target key start
LH: loop header
LB: loop body
LE: loop exit
PB: predicated region body
PF: predicated region fallthrough
CT: control target
= control target key end

     0   :  { %8 = vsyncpa [#allocation3], 0  ;;  %s258_s0 = inlined_call_operand.hbm [shape: f32[8,128], index: 0, kind: input, shape index: {}]   ;;  %s259_s1 = inlined_call_operand.hbm [shape: f32[8,128], index: 1, kind: input, shape index: {}]   ;;  %s260_s2 = inlined_call_operand.hbm [shape: f32[8,128], index: 2, kind: input, shape index: {}]   ;;  %s261_s3 = inlined_call_operand.hbm [shape: f32[1,8,128], index: 3, kind: output, shape index: {}]  }
   0x1   :  { %9 = vsyncpa [#allocation6], 0 }
   0x2   :  { %10 = vsyncpa [#allocation4], 0  ;;  %s186_s12 = smov [#allocation5]   ;;  %s187_s14 = smov [#allocation2]  }
   0x3   :  { %s27_s13 = sshll.u32 %s186_s12, 4  ;;  %s17_s15 = sshll.u32 %s187_s14, 4  ;;  %s28_s13 = int_to_ptr.vmem [resolvable:$true] %s27_s13  ;;  %s18_s15 = int_to_ptr.vmem [resolvable:$true] %s17_s15 }
   0x4   :  { %s92_s18 = scalar_lea.hbm %s259_s1, 128 }
   0x5   :  { %p93_p0 = scmp.ne.s32.totalorder %s259_s1, %s92_s18  ;;  %p96_p1 = scmp.lt.u32.totalorder %s92_s18, %s259_s1 }
   0x7   :  { %p98_p2 = pnand %p96_p1, %p93_p0 }
   0x9   :  { %101 = shalt.err (!%p98_p2)
}
   0xa   :  { %s102_s23 = scalar_lea.vmem %s28_s13, 128  ;;  %p107_p4 = scmp.lt.s32.totalorder %s28_s13, %s28_s13 }
   0xb   :  { %p103_p3 = scmp.ne.s32.totalorder %s28_s13, %s102_s23  ;;  %p108_p5 = scmp.lt.s32.totalorder %s102_s23, %s102_s23 }
   0xd   :  { %p109_p6 = por %p108_p5, %p107_p4 }
   0xf   :  { %p110_p7 = pnand %p109_p6, %p103_p3 }
  0x11   :  { %113 = shalt.err (!%p110_p7)
}
  0x12   :  { %30 = dma.hbm_to_vmem [thread:$0]  %s259_s1, 128, %s28_s13, [#allocation6]  }
  0x13   :  { %s114_s28 = scalar_lea.hbm %s258_s0, 128 }
  0x14   :  { %p115_p8 = scmp.ne.s32.totalorder %s258_s0, %s114_s28  ;;  %p118_p9 = scmp.lt.u32.totalorder %s114_s28, %s258_s0 }
  0x16   :  { %p120_p10 = pnand %p118_p9, %p115_p8 }
  0x18   :  { %123 = shalt.err (!%p120_p10)
}
  0x19   :  { %s124_s6 = scalar_lea.vmem %s18_s15, 128  ;;  %p129_p12 = scmp.lt.s32.totalorder %s18_s15, %s18_s15 }
  0x1a   :  { %p125_p11 = scmp.ne.s32.totalorder %s18_s15, %s124_s6  ;;  %p130_p13 = scmp.lt.s32.totalorder %s124_s6, %s124_s6 }
  0x1c   :  { %p131_p0 = por %p130_p13, %p129_p12 }
  0x1e   :  { %p132_p1 = pnand %p131_p0, %p125_p11 }
  0x20   :  { %135 = shalt.err (!%p132_p1)
}
  0x21   :  { %20 = dma.hbm_to_vmem [thread:$0]  %s258_s0, 128, %s18_s15, [#allocation3]  }
  0x22   :  { %s188_s8 = smov [#allocation7]   ;;  %s136_s12 = scalar_lea.hbm %s260_s2, 128 }
  0x23   :  { %s37_s9 = sshll.u32 %s188_s8, 4  ;;  %p137_p2 = scmp.ne.s32.totalorder %s260_s2, %s136_s12  ;;  %s38_s9 = int_to_ptr.vmem [resolvable:$true] %s37_s9 }
  0x24   :  { %p140_p3 = scmp.lt.u32.totalorder %s136_s12, %s260_s2 }
  0x26   :  { %p142_p4 = pnand %p140_p3, %p137_p2 }
  0x28   :  { %145 = shalt.err (!%p142_p4)
}
  0x29   :  { %s146_s18 = scalar_lea.vmem %s38_s9, 128  ;;  %p151_p6 = scmp.lt.s32.totalorder %s38_s9, %s38_s9 }
  0x2a   :  { %p147_p5 = scmp.ne.s32.totalorder %s38_s9, %s146_s18  ;;  %p152_p7 = scmp.lt.s32.totalorder %s146_s18, %s146_s18 }
  0x2c   :  { %p153_p8 = por %p152_p7, %p151_p6 }
  0x2e   :  { %p154_p9 = pnand %p153_p8, %p147_p5 }
  0x30   :  { %157 = shalt.err (!%p154_p9)
}
  0x31   :  { %40 = dma.hbm_to_vmem [thread:$0]  %s260_s2, 128, %s38_s9, [#allocation6]  }
  0x32   :  { %180 = dma.done.wait [#allocation3], 128  }
  0x33   :  { %181 = vsyncadd [#allocation3], 4294967168 }
  0x34   :  { %182 = dma.done.wait [#allocation6], 256  }
  0x35   :  { %183 = vsyncadd [#allocation6], 4294967040  ;;  %v57_v0 = vld [vmem:[#allocation7] sm:$0xff]  ;;  %v55_v1 = vld [vmem:[#allocation2] sm:$0xff]  ;;  %s189_s19 = smov [#allocation8]  }
  0x36   :  { %v56_v2 = vld [vmem:[#allocation5] sm:$0xff]  ;;  %v58_v3 = vmul.f32 %v57_v0, %v57_v0  ;;  %s75_s20 = sshll.u32 %s189_s19, 4  ;;  %s76_s20 = int_to_ptr.vmem [resolvable:$true] %s75_s20 }
  0x37   :  { %v59_v4 = vsub.f32 %v56_v2, %v55_v1  ;;  %s158_s2 = scalar_lea.vmem %s76_s20, 128  ;;  %p163_p11 = scmp.lt.s32.totalorder %s76_s20, %s76_s20 }
  0x38   :  { %90 = vlog2.f32 %v58_v3  ;;  %p159_p10 = scmp.ne.s32.totalorder %s76_s20, %s158_s2  ;;  %p164_p12 = scmp.lt.s32.totalorder %s158_s2, %s158_s2 }
  0x39   :  { %v62_v5 = vmul.f32 %v59_v4, %v59_v4 }
  0x3a   :  { %p165_p13 = por %p164_p12, %p163_p11 }
  0x3b   :  { %v63_v6 = vmul.f32 %v62_v5, %v58_v3 }
  0x3c   :  { %p166_p0 = pnand %p165_p13, %p159_p10 }
  0x42   :  { %v91_v7 = vpop.eup %90 }
  0x43   :  { %v61_v8 = vmul.f32 0.6931472, %v91_v7 }
  0x45   :  { %v64_v9 = vsub.f32 %v61_v8, %v63_v6 }
  0x47   :  { %68 = vst [vmem:[#allocation8] sm:$0xff] %v64_v9 }
  0x48   :  { %169 = shalt.err (!%p166_p0)
}
  0x49   :  { %s170_s23 = scalar_lea.hbm %s261_s3, 128 }
  0x4a   :  { %p171_p1 = scmp.ne.s32.totalorder %s261_s3, %s170_s23  ;;  %p174_p2 = scmp.lt.u32.totalorder %s170_s23, %s261_s3 }
  0x4c   :  { %p176_p3 = pnand %p174_p2, %p171_p1 }
  0x4e   :  { %179 = shalt.err (!%p176_p3)
}
  0x4f   :  { %78 = dma.vmem_to_hbm [thread:$0]  %s76_s20, 128, %s261_s3, [#allocation4]  }
  0x50   :  { %184 = dma.done.wait [#allocation4], 128  }
  0x51   :  { %185 = vsyncadd [#allocation4], 4294967168 }
  0x52   :  { %82 = vsyncpa [#allocation3], 1 }
  0x53   :  { %83 = vsyncpa [#allocation6], 1 }
  0x54   :  { %84 = vsyncpa [#allocation4], 1 }

</bundles_post_ra>
